<compile_context>
chip_gen: v6e
topology: v6e:2x2x1
jax: 0.10.0
libtpu: 0.0.40
codegen_flags: <defaults>
</compile_context>

<pallas_src>
import functools

import jax
import jax.numpy as jnp
import numpy as np
from jax.experimental import pallas as pl
from jax.experimental.pallas import tpu as pltpu


def _round_up(x, m):
    return ((x + m - 1) // m) * m


def _halo_align(dtype):
    # One full native sublane tile of the scratch dtype (8 rows for 4-byte,
    # 16 for bf16) so the halo-zero and activation stores are tile-aligned;
    # only the per-tap reads start at offset rows.
    return 8 * max(1, 4 // jnp.dtype(dtype).itemsize)


# ------------------- fused TemporalConvNet (all blocks) ------------------- #

def _tcn_kernel(*refs, block_meta):
    # refs = x, then per block: (w_i, b_i) per conv [+ (wd, bd) if downsample],
    #        out, then one padded-activation scratch per conv (all blocks).
    n_convs_total = sum(len(cm) for cm, _ in block_meta)
    idx = 0
    x_ref = refs[idx]; idx += 1
    block_refs = []
    for conv_meta, has_down in block_meta:
        convs = []
        for _ in conv_meta:
            convs.append((refs[idx], refs[idx + 1]))
            idx += 2
        down = None
        if has_down:
            down = (refs[idx], refs[idx + 1])
            idx += 2
        block_refs.append((convs, down))
    o_ref = refs[idx]; idx += 1
    pad_refs = refs[idx:idx + n_convs_total]

    L = o_ref.shape[1]
    x = x_ref[0]                                # (L, E), param/compute dtype
    pad_i = 0
    for (conv_meta, has_down), (convs, down) in zip(block_meta, block_refs):
        block_in = x
        h = block_in
        for (w_ref, b_ref), (K, d) in zip(convs, conv_meta):
            pad_ref = pad_refs[pad_i]; pad_i += 1
            pad = (K - 1) * d
            pad_up = pad_ref.shape[0] - L       # tile-aligned left halo (>= pad)
            # Causal left-pad inside VMEM (== Conv1d(padding=pad) + Chomp1d):
            # zero the halo rows, store the activation once (single cast to the
            # MXU operand dtype) tile-aligned after it.
            if pad_up > 0:
                pad_ref[pl.ds(0, pad_up), :] = jnp.zeros(
                    (pad_up, pad_ref.shape[1]), pad_ref.dtype)
            pad_ref[pl.ds(pad_up, L), :] = h.astype(pad_ref.dtype)

            # K small MXU matmuls accumulated in f32; bias added once after.
            acc = jnp.dot(pad_ref[pl.ds(pad_up - pad, L), :], w_ref[0],
                          preferred_element_type=jnp.float32)
            for k in range(1, K):
                acc = acc + jnp.dot(
                    pad_ref[pl.ds(pad_up - pad + k * d, L), :], w_ref[k],
                    preferred_element_type=jnp.float32)
            h = jnp.maximum(acc + b_ref[...], 0.0)   # ReLU; Dropout == identity

        # Residual path (optional 1x1 downsample conv) + output ReLU.
        if has_down:
            wd_ref, bd_ref = down
            res = jnp.dot(block_in.astype(wd_ref.dtype), wd_ref[...],
                          preferred_element_type=jnp.float32) + bd_ref[...]
        else:
            res = block_in.astype(jnp.float32)
        x = jnp.maximum(h + res, 0.0)           # f32 (L, Cout), stays in vregs

    o_ref[0] = x.astype(o_ref.dtype)


def temporal_conv_net(x, blocks):
    """Whole TemporalConvNet (all TemporalBlocks) in one fused pallas_call."""
    B, L, E = x.shape
    c_last = int(blocks[-1]["convs"][-1]["w"].shape[2])
    compute_dtype = x.dtype
    align = _halo_align(compute_dtype)

    args = [x]
    in_specs = [pl.BlockSpec((1, L, E), lambda i: (i, 0, 0))]
    scratch_shapes = []
    block_meta = []
    for blk in blocks:
        conv_meta = []
        for c in blk["convs"]:
            K, ci, co = (int(s) for s in c["w"].shape)
            d = int(c["dilation"])
            conv_meta.append((K, d))
            args += [c["w"], c["b"].reshape(1, co)]
            in_specs += [pl.BlockSpec((K, ci, co), lambda i: (0, 0, 0)),
                         pl.BlockSpec((1, co), lambda i: (0, 0))]
            pad_up = _round_up((K - 1) * d, align)
            scratch_shapes.append(pltpu.VMEM((pad_up + L, ci), compute_dtype))
        has_down = blk["down"] is not None
        if has_down:
            ci, co = (int(s) for s in blk["down"]["w"].shape)
            args += [blk["down"]["w"], blk["down"]["b"].reshape(1, co)]
            in_specs += [pl.BlockSpec((ci, co), lambda i: (0, 0)),
                         pl.BlockSpec((1, co), lambda i: (0, 0))]
        block_meta.append((tuple(conv_meta), has_down))

    kern = functools.partial(_tcn_kernel, block_meta=tuple(block_meta))
    return pl.pallas_call(
        kern,
        out_shape=jax.ShapeDtypeStruct((B, L, c_last), x.dtype),
        grid=(B,),
        in_specs=in_specs,
        out_specs=pl.BlockSpec((1, L, c_last), lambda i: (i, 0, 0)),
        scratch_shapes=scratch_shapes,
        compiler_params=pltpu.CompilerParams(
            dimension_semantics=("parallel",)),
    )(*args)


# ------------- fused projection + label-wise attention + logits ------------- #

def _head_kernel(x_ref, lw_ref, lb_ref, uft_ref, fb_ref, o_ref, *,
                 B, L, NCp, approx):
    # x: (B*L, C); lw: (C, P); lb: (1, P); uft: (P, 2*NCp) = [U ; final_w]^T
    # (each lane-padded to NCp); fb: (1, NCp); o: (B, NCp) lane-dense logits.
    x = x_ref[...]
    hid = jnp.dot(x, lw_ref[...], preferred_element_type=jnp.float32)
    hid = jnp.maximum(hid + lb_ref[...], 0.0)            # (B*L, P) f32
    hid_m = hid.astype(uft_ref.dtype)                    # MXU operand dtype

    # One MXU pass over hid produces both the attention scores (columns [0,NCp))
    # and the final-weight projection (columns [NCp, 2*NCp)).
    y = jnp.dot(hid_m, uft_ref[...], preferred_element_type=jnp.float32)
    attT = y[:, :NCp].reshape(B, L, NCp)                 # att^T: softmax over L
    g = y[:, NCp:].reshape(B, L, NCp)

    attT = attT - jnp.max(attT, axis=1, keepdims=True)
    e = jnp.exp(attT)
    s = jnp.sum(e, axis=1, keepdims=True)                # (B, 1, NCp)
    if approx:
        alpha = e * pl.reciprocal(s, approx=True)
    else:
        alpha = e / s

    # logits[b,n] = sum_l alpha[b,l,n] * (hid @ final_w^T)[b,l,n] + fb[n]
    logits = jnp.sum(alpha * g, axis=1) + fb_ref[...]    # (B, NCp)
    o_ref[...] = logits.astype(o_ref.dtype)


def dcan_head(x, lin_w, lin_b, u_w, f_w, f_b):
    B, L, C = x.shape
    P = int(lin_w.shape[1])
    NC = int(u_w.shape[0])
    NCp = _round_up(max(NC, 1), 128)       # lane-dense split & store; crop outside

    # Wrapper-side (weights only): concatenate U and final_w, lane-pad each to
    # NCp columns, pre-transpose so the kernel issues one plain (M,P)@(P,2*NCp).
    uf = jnp.zeros((2 * NCp, P), u_w.dtype)
    uf = uf.at[:NC, :].set(u_w)
    uf = uf.at[NCp:NCp + NC, :].set(f_w)
    uf_t = uf.T                                           # (P, 2*NCp)
    fb_pad = jnp.zeros((1, NCp), jnp.float32).at[0, :NC].set(
        f_b.astype(jnp.float32))

    x2 = x.reshape(B * L, C)               # free: contiguous HBM view
    approx = x.dtype != jnp.float32
    kern = functools.partial(_head_kernel, B=B, L=L, NCp=NCp, approx=approx)
    out = pl.pallas_call(
        kern,
        out_shape=jax.ShapeDtypeStruct((B, NCp), jnp.float32),
        grid=(1,),
        in_specs=[
            pl.BlockSpec((B * L, C), lambda i: (0, 0)),
            pl.BlockSpec((C, P), lambda i: (0, 0)),
            pl.BlockSpec((1, P), lambda i: (0, 0)),
            pl.BlockSpec((P, 2 * NCp), lambda i: (0, 0)),
            pl.BlockSpec((1, NCp), lambda i: (0, 0)),
        ],
        out_specs=pl.BlockSpec((B, NCp), lambda i: (0, 0)),
    )(x2, lin_w, lin_b.reshape(1, P), uf_t, fb_pad)
    return out[:, :NC]


# ------------------------------ model wrapper ------------------------------ #

def init_params(key, vocab, emb_size, channel_sizes, kernel_sizes, dilations,
                proj, num_classes):
    keys = iter(jax.random.split(key, 64))
    p = {"emb": jax.random.normal(next(keys), (vocab, emb_size), jnp.float32) * 0.1}
    blocks = []
    for chs, ks, ds in zip(channel_sizes, kernel_sizes, dilations):
        convs = []
        for cin, cout, K, d in zip(chs[:-1], chs[1:], ks, ds):
            v = jax.random.normal(next(keys), (K, cin, cout), jnp.float32) * 0.1
            g = 1.0 + 0.1 * jax.random.normal(next(keys), (cout,), jnp.float32)
            norm = jnp.sqrt(jnp.sum(v * v, axis=(0, 1), keepdims=True))
            w = v / norm * g[None, None, :]  # weight_norm: w = g * v / ||v||
            b = 0.01 * jax.random.normal(next(keys), (cout,), jnp.float32)
            convs.append({"w": w, "b": b, "dilation": d})
        block = {"convs": convs, "down": None}
        if chs[0] != chs[-1]:  # 1x1 downsample conv on the residual path
            block["down"] = {
                "w": jax.random.normal(next(keys), (chs[0], chs[-1]), jnp.float32) * 0.1,
                "b": 0.01 * jax.random.normal(next(keys), (chs[-1],), jnp.float32),
            }
        blocks.append(block)
    p["blocks"] = blocks
    c_last = channel_sizes[-1][-1]
    p["lin_w"] = jax.random.normal(next(keys), (c_last, proj), jnp.float32) * 0.1
    p["lin_b"] = 0.01 * jax.random.normal(next(keys), (proj,), jnp.float32)
    p["U"] = jax.random.normal(next(keys), (num_classes, proj), jnp.float32) * 0.1
    p["final_w"] = jax.random.normal(next(keys), (num_classes, proj), jnp.float32) * 0.1
    p["final_b"] = 0.01 * jax.random.normal(next(keys), (num_classes,), jnp.float32)
    return p


def dcan_forward(params, tokens):
    # TODO(synk): WordEmbeddingLayer token gather stays as plain-JAX glue
    # (per-row dynamic gather; not worth a kernel at these shapes).
    x = params["emb"][tokens]                            # (B, L, E)
    x = temporal_conv_net(x, params["blocks"])           # one fused pallas_call
    return dcan_head(x, params["lin_w"], params["lin_b"],
                     params["U"], params["final_w"], params["final_b"])


# ------------------------------ pure-JAX ref ------------------------------- #

def ref_forward(params, tokens):
    x = params["emb"][tokens]
    for block in params["blocks"]:
        h = x
        for conv in block["convs"]:
            K = conv["w"].shape[0]
            d = conv["dilation"]
            pad = (K - 1) * d
            hp = jnp.pad(h, ((0, 0), (pad, 0), (0, 0)))
            L = h.shape[1]
            y = jnp.zeros(h.shape[:2] + (conv["w"].shape[2],), jnp.float32) + conv["b"]
            for k in range(K):
                y = y + jnp.einsum("blc,cd->bld", hp[:, k * d:k * d + L, :], conv["w"][k])
            h = jax.nn.relu(y)
        if block["down"] is not None:
            res = jnp.einsum("blc,cd->bld", x, block["down"]["w"]) + block["down"]["b"]
        else:
            res = x
        x = jax.nn.relu(h + res)
    hid = jax.nn.relu(jnp.einsum("blc,cp->blp", x, params["lin_w"]) + params["lin_b"])
    att = jnp.einsum("np,blp->bnl", params["U"], hid)
    alpha = jax.nn.softmax(att, axis=2)
    m = jnp.einsum("bnl,blp->bnp", alpha, hid)
    return jnp.sum(params["final_w"][None] * m, axis=2) + params["final_b"]


# ---------------------------------- main ----------------------------------- #

if __name__ == "__main__":
    B, L, V, E = 2, 16, 50, 16
    channel_sizes = [[E, 32, 32], [32, 32, 32]]   # add_emb_size_to_channel_sizes=True
    kernel_sizes = [[3, 3], [3, 3]]
    dilations = [[1, 1], [2, 2]]                  # paddings = (K-1)*dilation (implicit)
    proj, num_classes = 24, 5

    key = jax.random.PRNGKey(0)
    pkey, tkey = jax.random.split(key)
    params = init_params(pkey, V, E, channel_sizes, kernel_sizes, dilations,
                         proj, num_classes)
    tokens = jax.random.randint(tkey, (B, L), 0, V)

    # f32 path: exact comparison against the pure-JAX reference.
    logits = jax.block_until_ready(dcan_forward(params, tokens))
    ref = ref_forward(params, tokens)
    assert logits.shape == (B, num_classes)
    np.testing.assert_allclose(np.asarray(logits), np.asarray(ref),
                               rtol=1e-4, atol=1e-4)

    # bf16 MXU-operand path (f32 accumulation in-kernel): loose comparison.
    def _to_bf16(a):
        if hasattr(a, "dtype") and a.dtype == jnp.float32:
            return a.astype(jnp.bfloat16)
        return a

    params_bf16 = jax.tree_util.tree_map(_to_bf16, params)
    logits_bf16 = jax.block_until_ready(dcan_forward(params_bf16, tokens))
    assert logits_bf16.shape == (B, num_classes)
    np.testing.assert_allclose(np.asarray(logits_bf16, dtype=np.float32),
                               np.asarray(ref), rtol=5e-2, atol=5e-2)

    print("KERNEL_OK")
</pallas_src>

<mosaic_0001>
module attributes {stable_mosaic.version = 11 : i64} {
  func.func @_tcn_kernel(%arg0: i32, %arg1: memref<1x16x16xf32, #tpu.memory_space<vmem>>, %arg2: memref<3x16x32xf32, #tpu.memory_space<vmem>>, %arg3: memref<1x32xf32, #tpu.memory_space<vmem>>, %arg4: memref<3x32x32xf32, #tpu.memory_space<vmem>>, %arg5: memref<1x32xf32, #tpu.memory_space<vmem>>, %arg6: memref<16x32xf32, #tpu.memory_space<vmem>>, %arg7: memref<1x32xf32, #tpu.memory_space<vmem>>, %arg8: memref<3x32x32xf32, #tpu.memory_space<vmem>>, %arg9: memref<1x32xf32, #tpu.memory_space<vmem>>, %arg10: memref<3x32x32xf32, #tpu.memory_space<vmem>>, %arg11: memref<1x32xf32, #tpu.memory_space<vmem>>, %arg12: memref<1x16x32xf32, #tpu.memory_space<vmem>>, %arg13: memref<24x16xf32, #tpu.memory_space<vmem>>, %arg14: memref<24x32xf32, #tpu.memory_space<vmem>>, %arg15: memref<24x32xf32, #tpu.memory_space<vmem>>, %arg16: memref<24x32xf32, #tpu.memory_space<vmem>>) attributes {dimension_semantics = [#tpu.dimension_semantics<parallel>], iteration_bounds = array<i64: 2>, scalar_prefetch = 0 : i64, scratch_operands = 4 : i64, tpu.core_type = #tpu.core_type<tc>, window_params = [{transform_indices = @transform_0, window_bounds = array<i64: 1, 16, 16>}, {pipeline_mode = #tpu.pipeline_mode<synchronous>, transform_indices = @transform_1, window_bounds = array<i64: 3, 16, 32>}, {pipeline_mode = #tpu.pipeline_mode<synchronous>, transform_indices = @transform_2, window_bounds = array<i64: 1, 32>}, {pipeline_mode = #tpu.pipeline_mode<synchronous>, transform_indices = @transform_3, window_bounds = array<i64: 3, 32, 32>}, {pipeline_mode = #tpu.pipeline_mode<synchronous>, transform_indices = @transform_4, window_bounds = array<i64: 1, 32>}, {pipeline_mode = #tpu.pipeline_mode<synchronous>, transform_indices = @transform_5, window_bounds = array<i64: 16, 32>}, {pipeline_mode = #tpu.pipeline_mode<synchronous>, transform_indices = @transform_6, window_bounds = array<i64: 1, 32>}, {pipeline_mode = #tpu.pipeline_mode<synchronous>, transform_indices = @transform_7, window_bounds = array<i64: 3, 32, 32>}, {pipeline_mode = #tpu.pipeline_mode<synchronous>, transform_indices = @transform_8, window_bounds = array<i64: 1, 32>}, {pipeline_mode = #tpu.pipeline_mode<synchronous>, transform_indices = @transform_9, window_bounds = array<i64: 3, 32, 32>}, {pipeline_mode = #tpu.pipeline_mode<synchronous>, transform_indices = @transform_10, window_bounds = array<i64: 1, 32>}, {transform_indices = @transform_11, window_bounds = array<i64: 1, 16, 32>}]} {
    %c0 = arith.constant 0 : index
    %c0_0 = arith.constant 0 : index
    %c0_1 = arith.constant 0 : index
    %0 = vector.load %arg1[%c0, %c0_0, %c0_1] : memref<1x16x16xf32, #tpu.memory_space<vmem>>, vector<1x16x16xf32>
    %1 = vector.shape_cast %0 : vector<1x16x16xf32> to vector<16x16xf32>
    %cst = arith.constant 0.000000e+00 : f32
    %2 = vector.broadcast %cst : f32 to vector<8x16xf32>
    %c0_2 = arith.constant 0 : index
    %c0_3 = arith.constant 0 : index
    %3 = vector.load %arg13[%c0_2, %c0_3] : memref<24x16xf32, #tpu.memory_space<vmem>>, vector<8x16xf32>
    tpu.vector_store %arg13[%c0_2, %c0_3], %2 {strides = array<i32>} : memref<24x16xf32, #tpu.memory_space<vmem>>, vector<8x16xf32>,
    %c8 = arith.constant 8 : index
    %c0_4 = arith.constant 0 : index
    %4 = vector.load %arg13[%c8, %c0_4] : memref<24x16xf32, #tpu.memory_space<vmem>>, vector<16x16xf32>
    tpu.vector_store %arg13[%c8, %c0_4], %1 {strides = array<i32>} : memref<24x16xf32, #tpu.memory_space<vmem>>, vector<16x16xf32>,
    %c6 = arith.constant 6 : index
    %c0_5 = arith.constant 0 : index
    %5 = vector.load %arg13[%c6, %c0_5] : memref<24x16xf32, #tpu.memory_space<vmem>>, vector<16x16xf32>
    %c0_6 = arith.constant 0 : index
    %c0_7 = arith.constant 0 : index
    %c0_8 = arith.constant 0 : index
    %6 = vector.load %arg2[%c0_6, %c0_7, %c0_8] : memref<3x16x32xf32, #tpu.memory_space<vmem>>, vector<1x16x32xf32>
    %7 = vector.shape_cast %6 : vector<1x16x32xf32> to vector<16x32xf32>
    %cst_9 = arith.constant dense<0.000000e+00> : vector<16x32xf32>
    %8 = tpu.matmul %5, %7, %cst_9 {dimension_numbers = #tpu.dot_dimension_numbers<[1], [0], [0], [1], [0, 0, 1, 1], [], []>} : vector<16x16xf32>, vector<16x32xf32>, vector<16x32xf32> -> vector<16x32xf32>
    %c7 = arith.constant 7 : index
    %c0_10 = arith.constant 0 : index
    %9 = vector.load %arg13[%c7, %c0_10] : memref<24x16xf32, #tpu.memory_space<vmem>>, vector<16x16xf32>
    %c1 = arith.constant 1 : index
    %c0_11 = arith.constant 0 : index
    %c0_12 = arith.constant 0 : index
    %10 = vector.load %arg2[%c1, %c0_11, %c0_12] : memref<3x16x32xf32, #tpu.memory_space<vmem>>, vector<1x16x32xf32>
    %11 = vector.shape_cast %10 : vector<1x16x32xf32> to vector<16x32xf32>
    %cst_13 = arith.constant dense<0.000000e+00> : vector<16x32xf32>
    %12 = tpu.matmul %9, %11, %cst_13 {dimension_numbers = #tpu.dot_dimension_numbers<[1], [0], [0], [1], [0, 0, 1, 1], [], []>} : vector<16x16xf32>, vector<16x32xf32>, vector<16x32xf32> -> vector<16x32xf32>
    %13 = arith.addf %8, %12 : vector<16x32xf32>
    %c8_14 = arith.constant 8 : index
    %c0_15 = arith.constant 0 : index
    %14 = vector.load %arg13[%c8_14, %c0_15] : memref<24x16xf32, #tpu.memory_space<vmem>>, vector<16x16xf32>
    %c2 = arith.constant 2 : index
    %c0_16 = arith.constant 0 : index
    %c0_17 = arith.constant 0 : index
    %15 = vector.load %arg2[%c2, %c0_16, %c0_17] : memref<3x16x32xf32, #tpu.memory_space<vmem>>, vector<1x16x32xf32>
    %16 = vector.shape_cast %15 : vector<1x16x32xf32> to vector<16x32xf32>
    %cst_18 = arith.constant dense<0.000000e+00> : vector<16x32xf32>
    %17 = tpu.matmul %14, %16, %cst_18 {dimension_numbers = #tpu.dot_dimension_numbers<[1], [0], [0], [1], [0, 0, 1, 1], [], []>} : vector<16x16xf32>, vector<16x32xf32>, vector<16x32xf32> -> vector<16x32xf32>
    %18 = arith.addf %13, %17 : vector<16x32xf32>
    %c0_19 = arith.constant 0 : index
    %c0_20 = arith.constant 0 : index
    %19 = vector.load %arg3[%c0_19, %c0_20] : memref<1x32xf32, #tpu.memory_space<vmem>>, vector<1x32xf32>
    %20 = vector.broadcast %19 : vector<1x32xf32> to vector<16x32xf32>
    %21 = arith.addf %18, %20 : vector<16x32xf32>
    %cst_21 = arith.constant 0.000000e+00 : f32
    %22 = vector.broadcast %cst_21 : f32 to vector<16x32xf32>
    %23 = arith.maximumf %21, %22 : vector<16x32xf32>
    %cst_22 = arith.constant 0.000000e+00 : f32
    %24 = vector.broadcast %cst_22 : f32 to vector<8x32xf32>
    %c0_23 = arith.constant 0 : index
    %c0_24 = arith.constant 0 : index
    %25 = vector.load %arg14[%c0_23, %c0_24] : memref<24x32xf32, #tpu.memory_space<vmem>>, vector<8x32xf32>
    tpu.vector_store %arg14[%c0_23, %c0_24], %24 {strides = array<i32>} : memref<24x32xf32, #tpu.memory_space<vmem>>, vector<8x32xf32>,
    %c8_25 = arith.constant 8 : index
    %c0_26 = arith.constant 0 : index
    %26 = vector.load %arg14[%c8_25, %c0_26] : memref<24x32xf32, #tpu.memory_space<vmem>>, vector<16x32xf32>
    tpu.vector_store %arg14[%c8_25, %c0_26], %23 {strides = array<i32>} : memref<24x32xf32, #tpu.memory_space<vmem>>, vector<16x32xf32>,
    %c6_27 = arith.constant 6 : index
    %c0_28 = arith.constant 0 : index
    %27 = vector.load %arg14[%c6_27, %c0_28] : memref<24x32xf32, #tpu.memory_space<vmem>>, vector<16x32xf32>
    %c0_29 = arith.constant 0 : index
    %c0_30 = arith.constant 0 : index
    %c0_31 = arith.constant 0 : index
    %28 = vector.load %arg4[%c0_29, %c0_30, %c0_31] : memref<3x32x32xf32, #tpu.memory_space<vmem>>, vector<1x32x32xf32>
    %29 = vector.shape_cast %28 : vector<1x32x32xf32> to vector<32x32xf32>
    %cst_32 = arith.constant dense<0.000000e+00> : vector<16x32xf32>
    %30 = tpu.matmul %27, %29, %cst_32 {dimension_numbers = #tpu.dot_dimension_numbers<[1], [0], [0], [1], [0, 0, 1, 1], [], []>} : vector<16x32xf32>, vector<32x32xf32>, vector<16x32xf32> -> vector<16x32xf32>
    %c7_33 = arith.constant 7 : index
    %c0_34 = arith.constant 0 : index
    %31 = vector.load %arg14[%c7_33, %c0_34] : memref<24x32xf32, #tpu.memory_space<vmem>>, vector<16x32xf32>
    %c1_35 = arith.constant 1 : index
    %c0_36 = arith.constant 0 : index
    %c0_37 = arith.constant 0 : index
    %32 = vector.load %arg4[%c1_35, %c0_36, %c0_37] : memref<3x32x32xf32, #tpu.memory_space<vmem>>, vector<1x32x32xf32>
    %33 = vector.shape_cast %32 : vector<1x32x32xf32> to vector<32x32xf32>
    %cst_38 = arith.constant dense<0.000000e+00> : vector<16x32xf32>
    %34 = tpu.matmul %31, %33, %cst_38 {dimension_numbers = #tpu.dot_dimension_numbers<[1], [0], [0], [1], [0, 0, 1, 1], [], []>} : vector<16x32xf32>, vector<32x32xf32>, vector<16x32xf32> -> vector<16x32xf32>
    %35 = arith.addf %30, %34 : vector<16x32xf32>
    %c8_39 = arith.constant 8 : index
    %c0_40 = arith.constant 0 : index
    %36 = vector.load %arg14[%c8_39, %c0_40] : memref<24x32xf32, #tpu.memory_space<vmem>>, vector<16x32xf32>
    %c2_41 = arith.constant 2 : index
    %c0_42 = arith.constant 0 : index
    %c0_43 = arith.constant 0 : index
    %37 = vector.load %arg4[%c2_41, %c0_42, %c0_43] : memref<3x32x32xf32, #tpu.memory_space<vmem>>, vector<1x32x32xf32>
    %38 = vector.shape_cast %37 : vector<1x32x32xf32> to vector<32x32xf32>
    %cst_44 = arith.constant dense<0.000000e+00> : vector<16x32xf32>
    %39 = tpu.matmul %36, %38, %cst_44 {dimension_numbers = #tpu.dot_dimension_numbers<[1], [0], [0], [1], [0, 0, 1, 1], [], []>} : vector<16x32xf32>, vector<32x32xf32>, vector<16x32xf32> -> vector<16x32xf32>
    %40 = arith.addf %35, %39 : vector<16x32xf32>
    %c0_45 = arith.constant 0 : index
    %c0_46 = arith.constant 0 : index
    %41 = vector.load %arg5[%c0_45, %c0_46] : memref<1x32xf32, #tpu.memory_space<vmem>>, vector<1x32xf32>
    %42 = vector.broadcast %41 : vector<1x32xf32> to vector<16x32xf32>
    %43 = arith.addf %40, %42 : vector<16x32xf32>
    %cst_47 = arith.constant 0.000000e+00 : f32
    %44 = vector.broadcast %cst_47 : f32 to vector<16x32xf32>
    %45 = arith.maximumf %43, %44 : vector<16x32xf32>
    %c0_48 = arith.constant 0 : index
    %c0_49 = arith.constant 0 : index
    %46 = vector.load %arg6[%c0_48, %c0_49] : memref<16x32xf32, #tpu.memory_space<vmem>>, vector<16x32xf32>
    %cst_50 = arith.constant dense<0.000000e+00> : vector<16x32xf32>
    %47 = tpu.matmul %1, %46, %cst_50 {dimension_numbers = #tpu.dot_dimension_numbers<[1], [0], [0], [1], [0, 0, 1, 1], [], []>} : vector<16x16xf32>, vector<16x32xf32>, vector<16x32xf32> -> vector<16x32xf32>
    %c0_51 = arith.constant 0 : index
    %c0_52 = arith.constant 0 : index
    %48 = vector.load %arg7[%c0_51, %c0_52] : memref<1x32xf32, #tpu.memory_space<vmem>>, vector<1x32xf32>
    %49 = vector.broadcast %48 : vector<1x32xf32> to vector<16x32xf32>
    %50 = arith.addf %47, %49 : vector<16x32xf32>
    %51 = arith.addf %45, %50 : vector<16x32xf32>
    %cst_53 = arith.constant 0.000000e+00 : f32
    %52 = vector.broadcast %cst_53 : f32 to vector<16x32xf32>
    %53 = arith.maximumf %51, %52 : vector<16x32xf32>
    %cst_54 = arith.constant 0.000000e+00 : f32
    %54 = vector.broadcast %cst_54 : f32 to vector<8x32xf32>
    %c0_55 = arith.constant 0 : index
    %c0_56 = arith.constant 0 : index
    %55 = vector.load %arg15[%c0_55, %c0_56] : memref<24x32xf32, #tpu.memory_space<vmem>>, vector<8x32xf32>
    tpu.vector_store %arg15[%c0_55, %c0_56], %54 {strides = array<i32>} : memref<24x32xf32, #tpu.memory_space<vmem>>, vector<8x32xf32>,
    %c8_57 = arith.constant 8 : index
    %c0_58 = arith.constant 0 : index
    %56 = vector.load %arg15[%c8_57, %c0_58] : memref<24x32xf32, #tpu.memory_space<vmem>>, vector<16x32xf32>
    tpu.vector_store %arg15[%c8_57, %c0_58], %53 {strides = array<i32>} : memref<24x32xf32, #tpu.memory_space<vmem>>, vector<16x32xf32>,
    %c4 = arith.constant 4 : index
    %c0_59 = arith.constant 0 : index
    %57 = vector.load %arg15[%c4, %c0_59] : memref<24x32xf32, #tpu.memory_space<vmem>>, vector<16x32xf32>
    %c0_60 = arith.constant 0 : index
    %c0_61 = arith.constant 0 : index
    %c0_62 = arith.constant 0 : index
    %58 = vector.load %arg8[%c0_60, %c0_61, %c0_62] : memref<3x32x32xf32, #tpu.memory_space<vmem>>, vector<1x32x32xf32>
    %59 = vector.shape_cast %58 : vector<1x32x32xf32> to vector<32x32xf32>
    %cst_63 = arith.constant dense<0.000000e+00> : vector<16x32xf32>
    %60 = tpu.matmul %57, %59, %cst_63 {dimension_numbers = #tpu.dot_dimension_numbers<[1], [0], [0], [1], [0, 0, 1, 1], [], []>} : vector<16x32xf32>, vector<32x32xf32>, vector<16x32xf32> -> vector<16x32xf32>
    %c6_64 = arith.constant 6 : index
    %c0_65 = arith.constant 0 : index
    %61 = vector.load %arg15[%c6_64, %c0_65] : memref<24x32xf32, #tpu.memory_space<vmem>>, vector<16x32xf32>
    %c1_66 = arith.constant 1 : index
    %c0_67 = arith.constant 0 : index
    %c0_68 = arith.constant 0 : index
    %62 = vector.load %arg8[%c1_66, %c0_67, %c0_68] : memref<3x32x32xf32, #tpu.memory_space<vmem>>, vector<1x32x32xf32>
    %63 = vector.shape_cast %62 : vector<1x32x32xf32> to vector<32x32xf32>
    %cst_69 = arith.constant dense<0.000000e+00> : vector<16x32xf32>
    %64 = tpu.matmul %61, %63, %cst_69 {dimension_numbers = #tpu.dot_dimension_numbers<[1], [0], [0], [1], [0, 0, 1, 1], [], []>} : vector<16x32xf32>, vector<32x32xf32>, vector<16x32xf32> -> vector<16x32xf32>
    %65 = arith.addf %60, %64 : vector<16x32xf32>
    %c8_70 = arith.constant 8 : index
    %c0_71 = arith.constant 0 : index
    %66 = vector.load %arg15[%c8_70, %c0_71] : memref<24x32xf32, #tpu.memory_space<vmem>>, vector<16x32xf32>
    %c2_72 = arith.constant 2 : index
    %c0_73 = arith.constant 0 : index
    %c0_74 = arith.constant 0 : index
    %67 = vector.load %arg8[%c2_72, %c0_73, %c0_74] : memref<3x32x32xf32, #tpu.memory_space<vmem>>, vector<1x32x32xf32>
    %68 = vector.shape_cast %67 : vector<1x32x32xf32> to vector<32x32xf32>
    %cst_75 = arith.constant dense<0.000000e+00> : vector<16x32xf32>
    %69 = tpu.matmul %66, %68, %cst_75 {dimension_numbers = #tpu.dot_dimension_numbers<[1], [0], [0], [1], [0, 0, 1, 1], [], []>} : vector<16x32xf32>, vector<32x32xf32>, vector<16x32xf32> -> vector<16x32xf32>
    %70 = arith.addf %65, %69 : vector<16x32xf32>
    %c0_76 = arith.constant 0 : index
    %c0_77 = arith.constant 0 : index
    %71 = vector.load %arg9[%c0_76, %c0_77] : memref<1x32xf32, #tpu.memory_space<vmem>>, vector<1x32xf32>
    %72 = vector.broadcast %71 : vector<1x32xf32> to vector<16x32xf32>
    %73 = arith.addf %70, %72 : vector<16x32xf32>
    %cst_78 = arith.constant 0.000000e+00 : f32
    %74 = vector.broadcast %cst_78 : f32 to vector<16x32xf32>
    %75 = arith.maximumf %73, %74 : vector<16x32xf32>
    %cst_79 = arith.constant 0.000000e+00 : f32
    %76 = vector.broadcast %cst_79 : f32 to vector<8x32xf32>
    %c0_80 = arith.constant 0 : index
    %c0_81 = arith.constant 0 : index
    %77 = vector.load %arg16[%c0_80, %c0_81] : memref<24x32xf32, #tpu.memory_space<vmem>>, vector<8x32xf32>
    tpu.vector_store %arg16[%c0_80, %c0_81], %76 {strides = array<i32>} : memref<24x32xf32, #tpu.memory_space<vmem>>, vector<8x32xf32>,
    %c8_82 = arith.constant 8 : index
    %c0_83 = arith.constant 0 : index
    %78 = vector.load %arg16[%c8_82, %c0_83] : memref<24x32xf32, #tpu.memory_space<vmem>>, vector<16x32xf32>
    tpu.vector_store %arg16[%c8_82, %c0_83], %75 {strides = array<i32>} : memref<24x32xf32, #tpu.memory_space<vmem>>, vector<16x32xf32>,
    %c4_84 = arith.constant 4 : index
    %c0_85 = arith.constant 0 : index
    %79 = vector.load %arg16[%c4_84, %c0_85] : memref<24x32xf32, #tpu.memory_space<vmem>>, vector<16x32xf32>
    %c0_86 = arith.constant 0 : index
    %c0_87 = arith.constant 0 : index
    %c0_88 = arith.constant 0 : index
    %80 = vector.load %arg10[%c0_86, %c0_87, %c0_88] : memref<3x32x32xf32, #tpu.memory_space<vmem>>, vector<1x32x32xf32>
    %81 = vector.shape_cast %80 : vector<1x32x32xf32> to vector<32x32xf32>
    %cst_89 = arith.constant dense<0.000000e+00> : vector<16x32xf32>
    %82 = tpu.matmul %79, %81, %cst_89 {dimension_numbers = #tpu.dot_dimension_numbers<[1], [0], [0], [1], [0, 0, 1, 1], [], []>} : vector<16x32xf32>, vector<32x32xf32>, vector<16x32xf32> -> vector<16x32xf32>
    %c6_90 = arith.constant 6 : index
    %c0_91 = arith.constant 0 : index
    %83 = vector.load %arg16[%c6_90, %c0_91] : memref<24x32xf32, #tpu.memory_space<vmem>>, vector<16x32xf32>
    %c1_92 = arith.constant 1 : index
    %c0_93 = arith.constant 0 : index
    %c0_94 = arith.constant 0 : index
    %84 = vector.load %arg10[%c1_92, %c0_93, %c0_94] : memref<3x32x32xf32, #tpu.memory_space<vmem>>, vector<1x32x32xf32>
    %85 = vector.shape_cast %84 : vector<1x32x32xf32> to vector<32x32xf32>
    %cst_95 = arith.constant dense<0.000000e+00> : vector<16x32xf32>
    %86 = tpu.matmul %83, %85, %cst_95 {dimension_numbers = #tpu.dot_dimension_numbers<[1], [0], [0], [1], [0, 0, 1, 1], [], []>} : vector<16x32xf32>, vector<32x32xf32>, vector<16x32xf32> -> vector<16x32xf32>
    %87 = arith.addf %82, %86 : vector<16x32xf32>
    %c8_96 = arith.constant 8 : index
    %c0_97 = arith.constant 0 : index
    %88 = vector.load %arg16[%c8_96, %c0_97] : memref<24x32xf32, #tpu.memory_space<vmem>>, vector<16x32xf32>
    %c2_98 = arith.constant 2 : index
    %c0_99 = arith.constant 0 : index
    %c0_100 = arith.constant 0 : index
    %89 = vector.load %arg10[%c2_98, %c0_99, %c0_100] : memref<3x32x32xf32, #tpu.memory_space<vmem>>, vector<1x32x32xf32>
    %90 = vector.shape_cast %89 : vector<1x32x32xf32> to vector<32x32xf32>
    %cst_101 = arith.constant dense<0.000000e+00> : vector<16x32xf32>
    %91 = tpu.matmul %88, %90, %cst_101 {dimension_numbers = #tpu.dot_dimension_numbers<[1], [0], [0], [1], [0, 0, 1, 1], [], []>} : vector<16x32xf32>, vector<32x32xf32>, vector<16x32xf32> -> vector<16x32xf32>
    %92 = arith.addf %87, %91 : vector<16x32xf32>
    %c0_102 = arith.constant 0 : index
    %c0_103 = arith.constant 0 : index
    %93 = vector.load %arg11[%c0_102, %c0_103] : memref<1x32xf32, #tpu.memory_space<vmem>>, vector<1x32xf32>
    %94 = vector.broadcast %93 : vector<1x32xf32> to vector<16x32xf32>
    %95 = arith.addf %92, %94 : vector<16x32xf32>
    %cst_104 = arith.constant 0.000000e+00 : f32
    %96 = vector.broadcast %cst_104 : f32 to vector<16x32xf32>
    %97 = arith.maximumf %95, %96 : vector<16x32xf32>
    %98 = arith.addf %97, %53 : vector<16x32xf32>
    %cst_105 = arith.constant 0.000000e+00 : f32
    %99 = vector.broadcast %cst_105 : f32 to vector<16x32xf32>
    %100 = arith.maximumf %98, %99 : vector<16x32xf32>
    %c0_106 = arith.constant 0 : index
    %c0_107 = arith.constant 0 : index
    %c0_108 = arith.constant 0 : index
    %101 = vector.load %arg12[%c0_106, %c0_107, %c0_108] : memref<1x16x32xf32, #tpu.memory_space<vmem>>, vector<1x16x32xf32>
    %102 = vector.shape_cast %101 : vector<1x16x32xf32> to vector<16x32xf32>
    %103 = vector.shape_cast %100 : vector<16x32xf32> to vector<1x16x32xf32>
    tpu.vector_store %arg12[%c0_106, %c0_107, %c0_108], %103 {strides = array<i32>} : memref<1x16x32xf32, #tpu.memory_space<vmem>>, vector<1x16x32xf32>,
    return
  }
  func.func @transform_0(%arg0: i32) -> (i32, i32, i32) {
    %c0_i32 = arith.constant 0 : i32
    %c0_i32_0 = arith.constant 0 : i32
    %c0_i32_1 = arith.constant 0 : i32
    return %arg0, %c0_i32, %c0_i32_0 : i32, i32, i32
  }
  func.func @transform_1(%arg0: i32) -> (i32, i32, i32) {
    %c0_i32 = arith.constant 0 : i32
    %c0_i32_0 = arith.constant 0 : i32
    %c0_i32_1 = arith.constant 0 : i32
    %c0_i32_2 = arith.constant 0 : i32
    return %c0_i32, %c0_i32_0, %c0_i32_1 : i32, i32, i32
  }
  func.func @transform_2(%arg0: i32) -> (i32, i32) {
    %c0_i32 = arith.constant 0 : i32
    %c0_i32_0 = arith.constant 0 : i32
    %c0_i32_1 = arith.constant 0 : i32
    return %c0_i32, %c0_i32_0 : i32, i32
  }
  func.func @transform_3(%arg0: i32) -> (i32, i32, i32) {
    %c0_i32 = arith.constant 0 : i32
    %c0_i32_0 = arith.constant 0 : i32
    %c0_i32_1 = arith.constant 0 : i32
    %c0_i32_2 = arith.constant 0 : i32
    return %c0_i32, %c0_i32_0, %c0_i32_1 : i32, i32, i32
  }
  func.func @transform_4(%arg0: i32) -> (i32, i32) {
    %c0_i32 = arith.constant 0 : i32
    %c0_i32_0 = arith.constant 0 : i32
    %c0_i32_1 = arith.constant 0 : i32
    return %c0_i32, %c0_i32_0 : i32, i32
  }
  func.func @transform_5(%arg0: i32) -> (i32, i32) {
    %c0_i32 = arith.constant 0 : i32
    %c0_i32_0 = arith.constant 0 : i32
    %c0_i32_1 = arith.constant 0 : i32
    return %c0_i32, %c0_i32_0 : i32, i32
  }
  func.func @transform_6(%arg0: i32) -> (i32, i32) {
    %c0_i32 = arith.constant 0 : i32
    %c0_i32_0 = arith.constant 0 : i32
    %c0_i32_1 = arith.constant 0 : i32
    return %c0_i32, %c0_i32_0 : i32, i32
  }
  func.func @transform_7(%arg0: i32) -> (i32, i32, i32) {
    %c0_i32 = arith.constant 0 : i32
    %c0_i32_0 = arith.constant 0 : i32
    %c0_i32_1 = arith.constant 0 : i32
    %c0_i32_2 = arith.constant 0 : i32
    return %c0_i32, %c0_i32_0, %c0_i32_1 : i32, i32, i32
  }
  func.func @transform_8(%arg0: i32) -> (i32, i32) {
    %c0_i32 = arith.constant 0 : i32
    %c0_i32_0 = arith.constant 0 : i32
    %c0_i32_1 = arith.constant 0 : i32
    return %c0_i32, %c0_i32_0 : i32, i32
  }
  func.func @transform_9(%arg0: i32) -> (i32, i32, i32) {
    %c0_i32 = arith.constant 0 : i32
    %c0_i32_0 = arith.constant 0 : i32
    %c0_i32_1 = arith.constant 0 : i32
    %c0_i32_2 = arith.constant 0 : i32
    return %c0_i32, %c0_i32_0, %c0_i32_1 : i32, i32, i32
  }
  func.func @transform_10(%arg0: i32) -> (i32, i32) {
    %c0_i32 = arith.constant 0 : i32
    %c0_i32_0 = arith.constant 0 : i32
    %c0_i32_1 = arith.constant 0 : i32
    return %c0_i32, %c0_i32_0 : i32, i32
  }
  func.func @transform_11(%arg0: i32) -> (i32, i32, i32) {
    %c0_i32 = arith.constant 0 : i32
    %c0_i32_0 = arith.constant 0 : i32
    %c0_i32_1 = arith.constant 0 : i32
    return %arg0, %c0_i32, %c0_i32_0 : i32, i32, i32
  }
}

</mosaic_0001>

<bundles_post_ra>
// kernel: tpu_custom_call.1
= control target key start
LH: loop header
LB: loop body
LE: loop exit
PB: predicated region body
PF: predicated region fallthrough
CT: control target
= control target key end

     0   :  { %s2821_s0 = inlined_call_operand.hbm [shape: f32[2,16,16], index: 0, kind: input, shape index: {}]   ;;  %s2822_s1 = inlined_call_operand.hbm [shape: f32[3,16,32], index: 1, kind: input, shape index: {}]   ;;  %s2823_s2 = inlined_call_operand.vmem [shape: f32[1,32], index: 2, kind: input, shape index: {}]   ;;  %s2824_s3 = inlined_call_operand.hbm [shape: f32[3,32,32], index: 3, kind: input, shape index: {}]   ;;  %s2825_s4 = inlined_call_operand.vmem [shape: f32[1,32], index: 4, kind: input, shape index: {}]   ;;  %s2826_s5 = inlined_call_operand.hbm [shape: f32[16,32], index: 5, kind: input, shape index: {}]   ;;  %s2827_s6 = inlined_call_operand.vmem [shape: f32[1,32], index: 6, kind: input, shape index: {}]   ;;  %s2828_s7 = inlined_call_operand.hbm [shape: f32[3,32,32], index: 7, kind: input, shape index: {}]   ;;  %s2829_s8 = inlined_call_operand.vmem [shape: f32[1,32], index: 8, kind: input, shape index: {}]   ;;  %s2830_s9 = inlined_call_operand.hbm [shape: f32[3,32,32], index: 9, kind: input, shape index: {}]   ;;  %s2831_s10 = inlined_call_operand.vmem [shape: f32[1,32], index: 10, kind: input, shape index: {}]   ;;  %s2832_s11 = inlined_call_operand.hbm [shape: f32[2,16,32], index: 11, kind: output, shape index: {}]  }
   0x1   :  { %2839 = sst [smem:[#allocation23_spill]] %s2822_s1 }
   0x2   :  { %2840 = sst [smem:[#allocation24_spill]] %s2824_s3 }
   0x3   :  { %2841 = sst [smem:[#allocation25_spill]] %s2826_s5 }
   0x4   :  { %2842 = sst [smem:[#allocation26_spill]] %s2828_s7 }
   0x5   :  { %2843 = sst [smem:[#allocation27_spill]] %s2830_s9 }
   0x6   :  { %16 = vsyncpa [#allocation7], 0 }
   0x7   :  { %18 = vsyncpa [#allocation7 + $0x1], 0 }
   0x8   :  { %19 = vsyncpa [#allocation10], 0 }
   0x9   :  { %20 = vsyncpa [#allocation13], 0 }
   0xa   :  { %21 = vsyncpa [#allocation16], 0 }
   0xb   :  { %22 = vsyncpa [#allocation8], 0 }
   0xc   :  { %24 = vsyncpa [#allocation8 + $0x1], 0  ;;  %s2491_s17 = smov 0   ;;  %s2493_s18 = smov 0  }
   0xd   :  { %s2495_s19 = smov 0   ;;  %s2497_s20 = smov 0  }
   0xe LB: > { %s2419_s21 = smov [#allocation9]   ;;  %s2512_s23 = sadd.s32 4294967295, %s2417_s20   ;;  %s2417_s20 = sphi %s2497_s20, %s2872_s20   ;;  %s2413_s19 = sphi %s2495_s19, %s2871_s19   ;;  %s2409_s18 = sphi %s2493_s18, %s2870_s18   ;;  %s2405_s17 = sphi %s2491_s17, %s2869_s17  }
   0xf   : > { %s309_s22 = sshll.u32 %s2419_s21, 4  ;;  %p1828_p0 = scmp.ge.s32.totalorder %s2417_s20, 1  ;;  %s310_s22 = int_to_ptr.vmem [resolvable:$true] %s309_s22 }
  0x10   : > { %p2835_p1 = scmp.eq.s32.totalorder %s2512_s23, 0  ;;  %p297_p2 = scmp.lt.s32.totalorder %s2417_s20, 3 }
  0x11   : > { %s2420_s25 = smov [#allocation12]   ;;  %s2421_s28 = smov [#allocation11]  }
  0x12   : > { %p2517_p3 = pnand %p1828_p0, %p297_p2  ;;  %s341_s26 = sshll.u32 %s2420_s25, 4  ;;  %s2530_s26 = int_to_ptr.vmem [resolvable:$true] %s341_s26 }
  0x13   : > { %s325_s29 = sshll.u32 %s2421_s28, 4  ;;  %s2194_s12 = scalar_lea.vmem %s310_s22, 768  ;;  %s2532_s29 = int_to_ptr.vmem [resolvable:$true] %s325_s29 }
  0x14   : > { %s2844_s24 = scalar_select %p2517_p3, 1, 0 }
  0x15   : > { %p2105_p5 = pneg %p2517_p3  ;;  %p2195_p8 = scmp.ne.s32.totalorder %s310_s22, %s2194_s12 }
  0x16   : > { %p2202_p11 = scmp.lt.s32.totalorder %s310_s22, %s310_s22  ;;  %p2203_p12 = scmp.lt.s32.totalorder %s2194_s12, %s2194_s12 }
  0x17   : > { %p2526_p6 = pnand %p2105_p5, %p2835_p1 }
  0x18   : > { %p2204_p13 = por %p2203_p12, %p2202_p11 }
  0x19   : > { %p2536_p7 = pneg %p2526_p6 }
  0x1b   : > { %p2197_p9 = pnand %p2195_p8, %p2536_p7 }
  0x1d   : > { %p2198_p10 = pneg %p2197_p9 }
  0x1f   : > { %p2205_p0 = pnand %p2204_p13, %p2198_p10 }
  0x21   : > { %2208 = shalt.err (!%p2205_p0)
}
  0x22   : > { %s2833_s13 = smov 128   ;;  %s2834_s14 = smov 8  }
  0x23   : > { %s2847_s1 = sld [smem:[#allocation23_spill]]  ;;  %s2220_s21 = scalar_lea.vmem %s2530_s26, 256 }
  0x24   : > { %p2221_p2 = scmp.ne.s32.totalorder %s2530_s26, %s2220_s21  ;;  %p2228_p9 = scmp.lt.s32.totalorder %s2530_s26, %s2530_s26 }
  0x25   : > { %p2229_p10 = scmp.lt.s32.totalorder %s2220_s21, %s2220_s21 }
  0x26   : > { %p2223_p5 = pnand %p2221_p2, %p2536_p7 }
  0x27   : > { %p2230_p11 = por %p2229_p10, %p2228_p9 }
  0x28   : > { %p2224_p8 = pneg %p2223_p5 }
  0x29   : > { %2108 = dma.hbm_to_vmem [thread:$0]  (!%p2526_p6), %s2847_s1, 768, %s310_s22, [#allocation10], %s2833_s13, %s2833_s13, %s2834_s14  }
  0x2a   : > { %p2231_p12 = pnand %p2230_p11, %p2224_p8 }
  0x2c   : > { %2234 = shalt.err (!%p2231_p12)
}
  0x2d   : > { %s2848_s5 = sld [smem:[#allocation25_spill]]  ;;  %s2246_s22 = scalar_lea.vmem %s2532_s29, 1536 }
  0x2e   : > { %p2247_p13 = scmp.ne.s32.totalorder %s2532_s29, %s2246_s22  ;;  %p2254_p5 = scmp.lt.s32.totalorder %s2532_s29, %s2532_s29 }
  0x2f   : > { %p2255_p8 = scmp.lt.s32.totalorder %s2246_s22, %s2246_s22 }
  0x30   : > { %p2249_p0 = pnand %p2247_p13, %p2536_p7 }
  0x31   : > { %p2256_p9 = por %p2255_p8, %p2254_p5 }
  0x32   : > { %p2250_p2 = pneg %p2249_p0 }
  0x33   : > { %2114 = dma.hbm_to_vmem [thread:$0]  (!%p2526_p6), %s2848_s5, 256, %s2530_s26, [#allocation13], %s2833_s13, %s2833_s13, %s2834_s14  }
  0x34   : > { %p2257_p10 = pnand %p2256_p9, %p2250_p2 }
  0x36   : > { %2260 = shalt.err (!%p2257_p10)
}
  0x37   : > { %s2849_s3 = sld [smem:[#allocation24_spill]]  ;;  %s2424_s26 = smov [#allocation14]  }
  0x38   : > { %s357_s16 = sshll.u32 %s2424_s26, 4  ;;  %s2425_s21 = smov [#allocation15]   ;;  %s358_s16 = int_to_ptr.vmem [resolvable:$true] %s357_s16 }
  0x39   : > { %s373_s25 = sshll.u32 %s2425_s21, 4  ;;  %s2272_s28 = scalar_lea.vmem %s358_s16, 1536  ;;  %s374_s25 = int_to_ptr.vmem [resolvable:$true] %s373_s25 }
  0x3a   : > { %p2273_p11 = scmp.ne.s32.totalorder %s358_s16, %s2272_s28  ;;  %p2280_p0 = scmp.lt.s32.totalorder %s358_s16, %s358_s16 }
  0x3b   : > { %p2281_p2 = scmp.lt.s32.totalorder %s2272_s28, %s2272_s28 }
  0x3c   : > { %p2275_p12 = pnand %p2273_p11, %p2536_p7 }
  0x3d   : > { %2111 = dma.hbm_to_vmem [thread:$0]  (!%p2526_p6), %s2849_s3, 1536, %s2532_s29, [#allocation10], %s2833_s13, %s2833_s13, %s2834_s14  }
  0x3e   : > { %p2276_p13 = pneg %p2275_p12  ;;  %p2282_p5 = por %p2281_p2, %p2280_p0 }
  0x40   : > { %p2283_p8 = pnand %p2282_p5, %p2276_p13 }
  0x42   : > { %2286 = shalt.err (!%p2283_p8)
}
  0x43   : > { %s2850_s7 = sld [smem:[#allocation26_spill]]  ;;  %s2298_s12 = scalar_lea.vmem %s374_s25, 1536 }
  0x44   : > { %p2299_p9 = scmp.ne.s32.totalorder %s374_s25, %s2298_s12  ;;  %p2306_p12 = scmp.lt.s32.totalorder %s374_s25, %s374_s25 }
  0x45   : > { %p2307_p0 = scmp.lt.s32.totalorder %s2298_s12, %s2298_s12 }
  0x46   : > { %p2301_p10 = pnand %p2299_p9, %p2536_p7 }
  0x47   : > { %p2308_p13 = por %p2307_p0, %p2306_p12 }
  0x48   : > { %p2302_p11 = pneg %p2301_p10 }
  0x49   : > { %2117 = dma.hbm_to_vmem [thread:$0]  (!%p2526_p6), %s2850_s7, 1536, %s358_s16, [#allocation13], %s2833_s13, %s2833_s13, %s2834_s14  }
  0x4a   : > { %p2309_p2 = pnand %p2308_p13, %p2302_p11 }
  0x4c   : > { %2312 = shalt.err (!%p2309_p2)
}
  0x4d   : > { %s2851_s9 = sld [smem:[#allocation27_spill]]  ;;  %s1827_s27 = sadd.s32 4294967294, %s2417_s20  }
  0x4e   : > { %s2602_s30 = sadd.s32 1, %s2417_s20   ;;  %s37_s16 = sadd.s32 1, %s2413_s19 }
  0x4f   : > { %s34_s21 = ssub.s32 %s2417_s20, %s2602_s30  ;;  %p44_p7 = scmp.ne.s32.totalorder %s2413_s19, %s2409_s18 }
  0x50   : > { %p35_p5 = scmp.eq.s32.totalorder %s34_s21, 0  ;;  %p45_p8 = scmp.eq.s32.totalorder %s2417_s20, 0 }
  0x51   : > { %p50_p9 = scmp.ne.s32.totalorder %s2409_s18, %s2405_s17  ;;  %p284_p10 = scmp.eq.s32.totalorder %s2512_s23, 1 }
  0x52   : > { %s2614_s28 = scalar_select %p35_p5, %s2413_s19, %s37_s16  }
  0x53   : > { %2120 = dma.hbm_to_vmem [thread:$0]  (!%p2526_p6), %s2851_s9, 1536, %s374_s25, [#allocation16], %s2833_s13, %s2833_s13, %s2834_s14  }
  0x54   : > { %p46_p11 = por %p45_p8, %p44_p7  ;;  %p2618_p12 = por %p2835_p1, %p50_p9 }
  0x55   : > { %p2622_p6 = por %p284_p10, %p44_p7  ;;  %p290_p0 = scmp.eq.s32.totalorder %s1827_s27, 1 }
  0x56   : > { %s2852_s29 = scalar_select %p2618_p12, 1, 0 }
  0x57   : > { %s2853_s25 = scalar_select %p2622_p6, 1, 0 }
  0x58   : > { %p2134_p13 = scmp.lt.s32.totalorder %s2417_s20, 2  ;;  %s390_s22 = sand.u32 1, %s2413_s19  }
  0x59   : > { %p2628_p2 = por %p290_p0, %p50_p9  ;;  %s1835_s15 = sshll.u32 %s390_s22, 4 }
  0x5a   : > { %s1882_s26 = sshll.u32 %s2417_s20, 8  ;;  %s394_s14 = scalar_lea.vmem [#allocation6], %s1835_s15 }
  0x5b   : > { %s2854_s12 = scalar_select %p2628_p2, 1, 0 }
  0x5c   : > { %s2636_s13 = scalar_lea.hbm %s2821_s0, %s1882_s26  ;;  %s401_s1 = sshll.u32 %s394_s14, 4  ;;  %s2642_s1 = int_to_ptr.vmem [resolvable:$true] %s401_s1 }
  0x5d   : > { %p2638_p7 = pnand %p2134_p13, %p46_p11  ;;  %s2644_s3 = scalar_lea.sflag [#allocation7], %s390_s22 }
  0x5e   : > { %s2313_s5 = scalar_lea.hbm %s2636_s13, 256  ;;  %s2318_s15 = scalar_lea.hbm %s2821_s0, 512 }
  0x5f   : > { %p2314_p5 = scmp.ne.s32.totalorder %s2636_s13, %s2313_s5  ;;  %p2315_p8 = pneg %p2638_p7 }
  0x60   : > { %p2319_p11 = scmp.lt.s32.totalorder %s2636_s13, %s2821_s0  ;;  %p2320_p0 = scmp.lt.s32.totalorder %s2318_s15, %s2313_s5 }
  0x61   : > { %p2316_p9 = pnand %p2315_p8, %p2314_p5 }
  0x62   : > { %p2321_p13 = por %p2320_p0, %p2319_p11 }
  0x63   : > { %p2317_p10 = pneg %p2316_p9 }
  0x65   : > { %p2322_p4 = pnand %p2321_p13, %p2317_p10 }
  0x67   : > { %2325 = shalt.err (!%p2322_p4)
}
  0x68   : > { %s2326_s22 = scalar_lea.vmem %s2642_s1, 256  ;;  %s2426_s7 = smov [#allocation6]  }
  0x69   : > { %p2327_p1 = scmp.ne.s32.totalorder %s2642_s1, %s2326_s22  ;;  %s2331_s9 = sshll.u32 %s2426_s7, 4  ;;  %s2332_s9 = int_to_ptr.vmem [resolvable:$false] %s2331_s9 }
  0x6a   : > { %s2333_s26 = scalar_lea.vmem %s2332_s9, 512  ;;  %p2334_p9 = scmp.lt.s32.totalorder %s2642_s1, %s2332_s9 }
  0x6b   : > { %p2329_p2 = pnand %p2327_p1, %p2315_p8  ;;  %p2335_p6 = scmp.lt.s32.totalorder %s2333_s26, %s2326_s22 }
  0x6d   : > { %p2330_p5 = pneg %p2329_p2  ;;  %p2336_p12 = por %p2335_p6, %p2334_p9 }
  0x6f   : > { %p2337_p3 = pnand %p2336_p12, %p2330_p5 }
  0x71   : > { %2340 = shalt.err (!%p2337_p3)
}
  0x72   : > { %s2856_s5 = smov 8   ;;  %s2857_s16 = smov 128  }
  0x73   : > { %2124 = dma.hbm_to_vmem [thread:$0]  (!%p2638_p7), %s2636_s13, 256, %s2642_s1, %s2644_s3, %s2857_s16, %s2857_s16, %s2856_s5  }
  0x74   : > { %p2858_p1 = scmp.ne.s32.totalorder %s2844_s24, 0 }
  0x75   : > { %s2671_s7 = sand.u32 (!%p2858_p1), 1, %s2409_s18   ;;  %p2859_p3 = scmp.ne.s32.totalorder (!%p2858_p1), %s2852_s29, 0 }
  0x76   : > { %413 = sbr.rel (%p2858_p1) target bundleno = 1027 (0x403), region = 64  ;;  %s1839_s9 = sshll.u32 (!%p2858_p1), %s2671_s7, 4 }
  0x77   : > { %s416_s15 = scalar_lea.sflag (!%p2858_p1), [#allocation7], %s2671_s7  ;;  %s419_s27 = scalar_lea.vmem (!%p2858_p1), [#allocation6], %s1839_s9 }
  0x7b   : > { %2384 = dma.done.wait (%p2859_p3), %s416_s15, 256  }
  0x7c   : > { %2386 = vsyncadd (%p2859_p3), %s416_s15, 4294967040  ;;  %p2860_p4 = scmp.eq.s32.totalorder %s2512_s23, 0 }
  0x7e   : > { %2388 = dma.done.wait (%p2860_p4), [#allocation10], 2304   ;;  %p2861_p12 = pmov %p2860_p4 }
  0x7f   : > { %p2862_p6 = pmov %p2860_p4 }
  0x80   : > { %2390 = vsyncadd (%p2861_p12), [#allocation10], 4294964992 }
  0x81   : > { %2392 = dma.done.wait (%p2862_p6), [#allocation13], 1792   ;;  %p2863_p2 = pmov %p2860_p4 }
  0x83   : > { %2394 = vsyncadd (%p2863_p2), [#allocation13], 4294965504  ;;  %p2864_p7 = pmov %p2863_p2 }
  0x84   : > { %p2865_p8 = pmov %p2863_p2 }
  0x85   : > { %2396 = dma.done.wait (%p2864_p7), [#allocation16], 1536  }
  0x86   : > { %2398 = vsyncadd (%p2865_p8), [#allocation16], 4294965760  ;;  %vm480_vm0 = vcmask 130048   ;;  %v2427_v0 = vmov 0.0   ;;  %v492_v1 = vld [vmem:[#allocation9 + $0x18] sm:$0xff]  ;;  %v487_v2 = vld [vmem:[#allocation9 + $0x8] sm:$0xff] }
  0x87   : > { %481 = vst.msk [vmem:[#allocation2] sm:$0xff] %vm480_vm0, %v2427_v0  ;;  %v491_v3 = vld [vmem:[#allocation9 + $0x10] sm:$0xff]  ;;  %1954 = vmatprep.subr.mxu0 %v492_v1  ;;  %1961 = vmatprep.subr.mxu1 %v487_v2  ;;  %v486_v4 = vld [vmem:[#allocation9] sm:$0xff]  ;;  %v659_v6 = vld [vmem:[#allocation9 + $0x28] sm:$0xff]  ;;  %vm754_vm1 = vcmask 261120   ;;  %s1883_s16 = sshll.u32 %s2512_s23, 8 }
  0x88   : > { %v2694_v5 = vld [vmem:[%s419_s27] sm:$0xff]  ;;  %1955 = vmatpush3.msra.mxu0 %v492_v1  ;;  %1962 = vmatpush3.msra.mxu1 %v487_v2  ;;  %v2698_v7 = vld [vmem:[%s419_s27 + $0x8] sm:$0xff]  ;;  %755 = vst.msk [vmem:[#allocation3] sm:$0xff] %vm754_vm1, %v2427_v0  ;;  %1128 = vst.msk [vmem:[#allocation4] sm:$0xff] %vm754_vm1, %v2427_v0  ;;  %s477_s15 = scalar_lea.vmem [#allocation17], %s1839_s9  ;;  %s2774_s24 = scalar_lea.hbm %s2832_s11, %s1883_s16 }
  0x89   : > { %482 = vst.msk [vmem:[#allocation2 + $0x8] sm:$0xff] %vm480_vm0, %v2694_v5  ;;  %1956 = vmatprep.subr.mxu0 %v491_v3  ;;  %1963 = vmatprep.subr.mxu1 %v486_v4  ;;  %483 = vst.msk [vmem:[#allocation2 + $0x10] sm:$0xff] %vm480_vm0, %v2698_v7  ;;  %v658_v13 = vld [vmem:[#allocation9 + $0x20] sm:$0xff]  ;;  %v770_v15 = vld [vmem:[#allocation11 + $0x38] sm:$0xff]  ;;  %s1706_s27 = sshll.u32 %s477_s15, 4  ;;  %s1693_s23 = scalar_lea.sflag [#allocation8], %s2671_s7  ;;  %s2776_s27 = int_to_ptr.vmem [resolvable:$true] %s1706_s27 }
  0x8a   : > { %1957 = vmatpush3.msra.mxu0 %v491_v3  ;;  %1964 = vmatpush3.msra.mxu1 %v486_v4  ;;  %1407 = vst.msk [vmem:[#allocation5] sm:$0xff] %vm754_vm1, %v2427_v0  ;;  %v763_v16 = vld [vmem:[#allocation11 + $0x18] sm:$0xff]  ;;  %v769_v17 = vld [vmem:[#allocation11 + $0x30] sm:$0xff]  ;;  %v768_v19 = vld [vmem:[#allocation11 + $0x28] sm:$0xff]  ;;  %s2341_s9 = scalar_lea.vmem %s2776_s27, 256  ;;  %p2866_p11 = scmp.ne.s32.totalorder %s2853_s25, 0 }
  0x8b   : > { %1968 = vmatprep.subr.mxu0 %v659_v6  ;;  %1975 = vmatprep.subr.mxu1 %v770_v15  ;;  %v762_v18 = vld [vmem:[#allocation11 + $0x10] sm:$0xff]  ;;  %v761_v20 = vld [vmem:[#allocation11 + $0x8] sm:$0xff]  ;;  %v767_v21 = vld [vmem:[#allocation11 + $0x20] sm:$0xff]  ;;  %p2342_p10 = scmp.ne.s32.totalorder %s2776_s27, %s2341_s9  ;;  %s2428_s13 = smov [#allocation17]  }
  0x8c   : > { %v760_v22 = vld [vmem:[#allocation11] sm:$0xff]  ;;  %v939_v23 = vld [vmem:[#allocation11 + $0x58] sm:$0xff]  ;;  %v1035_v24 = vld [vmem:[#allocation12 + $0x8] sm:$0xff]  ;;  %s2345_s29 = sshll.u32 %s2428_s13, 4  ;;  %s2346_s29 = int_to_ptr.vmem [resolvable:$false] %s2345_s29 }
  0x8d   : > { %v1852_v31 = vld [vmem:[%s2823_s2] ss:$0 sm:$0xff]  ;;  %v1034_v46 = vld [vmem:[#allocation12] sm:$0xff]  ;;  %v937_v47 = vld [vmem:[#allocation11 + $0x48] sm:$0xff]  ;;  %p2343_p0 = pnand %p2342_p10, %p2866_p11  ;;  %s2347_s14 = scalar_lea.vmem %s2346_s29, 512 }
  0x8e   : > { %v938_v44 = vld [vmem:[#allocation11 + $0x50] sm:$0xff]  ;;  %v936_v48 = vld [vmem:[#allocation11 + $0x40] sm:$0xff]  ;;  %v1143_v50 = vld [vmem:[#allocation14 + $0x38] sm:$0xff]  ;;  %p2348_p5 = scmp.lt.s32.totalorder %s2776_s27, %s2346_s29  ;;  %p2349_p9 = scmp.lt.s32.totalorder %s2347_s14, %s2341_s9 }
  0x8f   : > { %v1136_v51 = vld [vmem:[#allocation14 + $0x18] sm:$0xff]  ;;  %v1142_v52 = vld [vmem:[#allocation14 + $0x30] sm:$0xff]  ;;  %v1141_v54 = vld [vmem:[#allocation14 + $0x28] sm:$0xff]  ;;  %p2344_p13 = pneg %p2343_p0 }
  0x90   : > { %v488_v8 = vld [vmem:[#allocation2 + $0x7] sm:$0xff]  ;;  %v489_v11 = vld [vmem:[#allocation2 + $0xf] sm:$0xff]  ;;  %v1312_v58 = vld [vmem:[#allocation14 + $0x58] sm:$0xff]  ;;  %p2350_p1 = por %p2349_p9, %p2348_p5 }
  0x91   : > { %v484_v9 = vld [vmem:[#allocation2 + $0x6] sm:$0xff]  ;;  %1958 = vmatprep.mubr.msk.f32.mxu0 %vm480_vm0, %v488_v8  ;;  %v485_v12 = vld [vmem:[#allocation2 + $0xe] sm:$0xff]  ;;  %v1859_v1 = vld [vmem:[%s2825_s4] ss:$0 sm:$0xff] }
  0x92   : > { %v655_v10 = vld [vmem:[#allocation2 + $0x8] sm:$0xff]  ;;  %1965 = vmatprep.mubr.msk.f32.mxu1 %vm480_vm0, %v484_v9  ;;  %1959 = vmatmul.mubr.msk.f32.vlgmr.msra.gmra.mxu0 %vm480_vm0, %v489_v11  ;;  %v656_v14 = vld [vmem:[#allocation2 + $0x10] sm:$0xff]  ;;  %v1140_v56 = vld [vmem:[#allocation14 + $0x20] sm:$0xff]  ;;  %p2351_p3 = pnand %p2350_p1, %p2344_p13 }
  0x93   : > { %1966 = vmatmul.mubr.msk.f32.vlgmr.msra.gmra.mxu1 %vm480_vm0, %v485_v12  ;;  %1969 = vmatpush3.msra.mxu0 %v659_v6  ;;  %v1135_v53 = vld [vmem:[#allocation14 + $0x10] sm:$0xff]  ;;  %v1134_v55 = vld [vmem:[#allocation14 + $0x8] sm:$0xff]  ;;  %v1133_v57 = vld [vmem:[#allocation14] sm:$0xff] }
  0x94   : > { %1972 = vmatprep.mubr.msk.f32.mxu0 %vm480_vm0, %v655_v10  ;;  %1970 = vmatprep.subr.mxu0 %v658_v13  ;;  %v1860_v3 = vld [vmem:[%s2827_s6] ss:$0 sm:$0xff] }
  0x95   : > { %1971 = vmatpush3.msra.mxu0 %v658_v13  ;;  %1976 = vmatpush3.msra.mxu1 %v770_v15 }
  0x96   : > { %1973 = vmatmul.mubr.msk.f32.vlgmr.msra.gmra.mxu0 %vm480_vm0, %v656_v14  ;;  %1986 = vmatprep.subr.mxu0 %v763_v16 }
  0x97   : > { %1977 = vmatprep.subr.mxu1 %v769_v17  ;;  %1987 = vmatpush3.msra.mxu0 %v763_v16 }
  0x98   : > { %1978 = vmatpush3.msra.mxu1 %v769_v17  ;;  %1988 = vmatprep.subr.mxu0 %v762_v18 }
  0x99   : > { %1979 = vmatprep.subr.mxu1 %v768_v19  ;;  %1989 = vmatpush3.msra.mxu0 %v762_v18 }
  0x9a   : > { %1980 = vmatpush3.msra.mxu1 %v768_v19  ;;  %1990 = vmatprep.subr.mxu0 %v761_v20 }
  0x9b   : > { %1981 = vmatprep.subr.mxu1 %v767_v21  ;;  %1991 = vmatpush3.msra.mxu0 %v761_v20 }
  0x9c   : > { %1982 = vmatpush3.msra.mxu1 %v767_v21  ;;  %1992 = vmatprep.subr.mxu0 %v760_v22 }
  0x9d   : > { %1993 = vmatpush3.msra.mxu0 %v760_v22  ;;  %1997 = vmatprep.subr.mxu1 %v939_v23 }
  0x9e   : > { %2008 = vmatprep.subr.mxu0 %v1035_v24 }
 0x152   : > { %v1960_v25 = vpop.f32.mrf.mxu0 }
 0x153   : > { %v1967_v26 = vpop.f32.mrf.mxu1 }
 0x154   : > { %v565_v27 = vpop.f32.mrf.mxu0  ;;  %v652_v29 = vadd.f32 %v1967_v26, %v1960_v25  ;;  %v1310_v25 = vld [vmem:[#allocation14 + $0x48] sm:$0xff]  ;;  %v1309_v26 = vld [vmem:[#allocation14 + $0x40] sm:$0xff] }
 0x155   : > { %v646_v28 = vpop.f32.mrf.mxu1 }
 0x156   : > { %v1974_v30 = vpop.f32.mrf.mxu0  ;;  %v647_v32 = vadd.f32 %v646_v28, %v565_v27  ;;  %v1422_v28 = vld [vmem:[#allocation15 + $0x38] sm:$0xff] }
 0x157   : > { %v742_v33 = vadd.f32 %v1974_v30, %v652_v29  ;;  %v1415_v29 = vld [vmem:[#allocation15 + $0x18] sm:$0xff]  ;;  %v1421_v30 = vld [vmem:[#allocation15 + $0x30] sm:$0xff] }
 0x158   : > { %v732_v34 = vpop.f32.mrf.mxu0 }
 0x159   : > { %v751_v35 = vadd.f32 %v1852_v31, %v742_v33  ;;  %v741_v36 = vadd.f32 %v732_v34, %v647_v32  ;;  %v1420_v32 = vld [vmem:[#allocation15 + $0x28] sm:$0xff]  ;;  %v1419_v34 = vld [vmem:[#allocation15 + $0x20] sm:$0xff] }
 0x15a   : > { %v1413_v33 = vld [vmem:[#allocation15 + $0x8] sm:$0xff] }
 0x15b   : > { %v753_v37 = vmax.f32 %v751_v35, 0.0  ;;  %v750_v38 = vadd.f32 %v1852_v31, %v741_v36  ;;  %v1414_v31 = vld [vmem:[#allocation15 + $0x10] sm:$0xff]  ;;  %v1412_v35 = vld [vmem:[#allocation15] sm:$0xff]  ;;  %v1591_v36 = vld [vmem:[#allocation15 + $0x58] sm:$0xff] }
 0x15d   : > { %757 = vst.msk [vmem:[#allocation3 + $0x10] sm:$0xff] %vm754_vm1, %v753_v37  ;;  %v752_v39 = vmax.f32 %v750_v38, 0.0 }
 0x15f   : > { %756 = vst.msk [vmem:[#allocation3 + $0x8] sm:$0xff] %vm754_vm1, %v752_v39 }
 0x164   : > { %v934_v49 = vld [vmem:[#allocation3 + $0x10] sm:$0xff] }
 0x166   : > { %v764_v40 = vld [vmem:[#allocation3 + $0x7] sm:$0xff]  ;;  %v765_v42 = vld [vmem:[#allocation3 + $0xf] sm:$0xff] }
 0x167   : > { %v758_v41 = vld [vmem:[#allocation3 + $0x6] sm:$0xff]  ;;  %1983 = vmatprep.mubr.msk.f32.mxu1 %vm754_vm1, %v764_v40  ;;  %v759_v43 = vld [vmem:[#allocation3 + $0xe] sm:$0xff] }
 0x168   : > { %1994 = vmatprep.mubr.msk.f32.mxu0 %vm754_vm1, %v758_v41  ;;  %1984 = vmatmul.mubr.msk.f32.vlgmr.msra.gmra.mxu1 %vm754_vm1, %v765_v42  ;;  %v933_v45 = vld [vmem:[#allocation3 + $0x8] sm:$0xff] }
 0x169   : > { %1995 = vmatmul.mubr.msk.f32.vlgmr.msra.gmra.mxu0 %vm754_vm1, %v759_v43  ;;  %1998 = vmatpush3.msra.mxu1 %v939_v23  ;;  %v1311_v23 = vld [vmem:[#allocation14 + $0x50] sm:$0xff]  ;;  %v1869_v43 = vld [vmem:[%s2829_s8] ss:$0 sm:$0xff] }
 0x16a   : > { %2005 = vmatprep.mubr.msk.f32.mxu1 %vm754_vm1, %v933_v45  ;;  %1999 = vmatprep.subr.mxu1 %v938_v44 }
 0x16b   : > { %2009 = vmatpush3.msra.mxu0 %v1035_v24  ;;  %2000 = vmatpush3.msra.mxu1 %v938_v44 }
 0x16c   : > { %2010 = vmatprep.subr.mxu0 %v1034_v46  ;;  %2001 = vmatprep.subr.mxu1 %v937_v47 }
 0x16d   : > { %2011 = vmatpush3.msra.mxu0 %v1034_v46  ;;  %2002 = vmatpush3.msra.mxu1 %v937_v47 }
 0x16e   : > { %2012 = vmatprep.mubr.msk.f32.mxu0 %vm480_vm0, %v2694_v5  ;;  %2003 = vmatprep.subr.mxu1 %v936_v48 }
 0x16f   : > { %2013 = vmatmul.mubr.msk.f32.vlgmr.msra.gmra.mxu0 %vm480_vm0, %v2698_v7  ;;  %2004 = vmatpush3.msra.mxu1 %v936_v48 }
 0x170   : > { %2006 = vmatmul.mubr.msk.f32.vlgmr.msra.gmra.mxu1 %vm754_vm1, %v934_v49  ;;  %2015 = vmatprep.subr.mxu0 %v1143_v50 }
 0x171   : > { %2016 = vmatpush3.msra.mxu0 %v1143_v50  ;;  %2026 = vmatprep.subr.mxu1 %v1136_v51 }
 0x172   : > { %2017 = vmatprep.subr.mxu0 %v1142_v52  ;;  %2027 = vmatpush3.msra.mxu1 %v1136_v51 }
 0x173   : > { %2018 = vmatpush3.msra.mxu0 %v1142_v52  ;;  %2028 = vmatprep.subr.mxu1 %v1135_v53 }
 0x174   : > { %2019 = vmatprep.subr.mxu0 %v1141_v54  ;;  %2029 = vmatpush3.msra.mxu1 %v1135_v53 }
 0x175   : > { %2020 = vmatpush3.msra.mxu0 %v1141_v54  ;;  %2030 = vmatprep.subr.mxu1 %v1134_v55 }
 0x176   : > { %2021 = vmatprep.subr.mxu0 %v1140_v56  ;;  %2031 = vmatpush3.msra.mxu1 %v1134_v55 }
 0x177   : > { %2022 = vmatpush3.msra.mxu0 %v1140_v56  ;;  %2032 = vmatprep.subr.mxu1 %v1133_v57  ;;  %v1590_v56 = vld [vmem:[#allocation15 + $0x50] sm:$0xff] }
 0x178   : > { %2033 = vmatpush3.msra.mxu1 %v1133_v57  ;;  %2037 = vmatprep.subr.mxu0 %v1312_v58 }
 0x179   : > { %2048 = vmatprep.subr.mxu1 %v1422_v28 }
 0x228   : > { %v1985_v59 = vpop.f32.mrf.mxu1 }
 0x229   : > { %v1996_v60 = vpop.f32.mrf.mxu0 }
 0x22a   : > { %v843_v61 = vpop.f32.mrf.mxu1  ;;  %v930_v63 = vadd.f32 %v1996_v60, %v1985_v59  ;;  %v1588_v59 = vld [vmem:[#allocation15 + $0x40] sm:$0xff] }
 0x22b   : > { %v924_v62 = vpop.f32.mrf.mxu0 }
 0x22c   : > { %v925_v4 = vadd.f32 %v924_v62, %v843_v61 }
 0x22f   : > { %v2014_v2 = vpop.f32.mrf.mxu0 }
 0x230   : > { %v2007_v0 = vpop.f32.mrf.mxu1  ;;  %v1121_v9 = vadd.f32 %v2014_v2, %v1860_v3 }
 0x231   : > { %v1022_v5 = vadd.f32 %v2007_v0, %v930_v63  ;;  %v1115_v10 = vpop.f32.mrf.mxu0 }
 0x232   : > { %v1012_v6 = vpop.f32.mrf.mxu1  ;;  %v1116_v15 = vadd.f32 %v1860_v3, %v1115_v10  ;;  %v1876_v3 = vld [vmem:[%s2831_s10] ss:$0 sm:$0xff] }
 0x233   : > { %v1031_v7 = vadd.f32 %v1859_v1, %v1022_v5  ;;  %v1021_v8 = vadd.f32 %v1012_v6, %v925_v4 }
 0x235   : > { %v1033_v11 = vmax.f32 %v1031_v7, 0.0  ;;  %v1030_v12 = vadd.f32 %v1859_v1, %v1021_v8 }
 0x237   : > { %v1032_v13 = vmax.f32 %v1030_v12, 0.0  ;;  %v2732_v14 = vadd.f32 %v1121_v9, %v1033_v11 }
 0x239   : > { %v1127_v16 = vmax.f32 %v2732_v14, 0.0  ;;  %v2735_v17 = vadd.f32 %v1116_v15, %v1032_v13 }
 0x23b   : > { %1130 = vst.msk [vmem:[#allocation4 + $0x10] sm:$0xff] %vm754_vm1, %v1127_v16  ;;  %v1126_v18 = vmax.f32 %v2735_v17, 0.0 }
 0x23d   : > { %1129 = vst.msk [vmem:[#allocation4 + $0x8] sm:$0xff] %vm754_vm1, %v1126_v18 }
 0x242   : > { %v1307_v27 = vld [vmem:[#allocation4 + $0x10] sm:$0xff] }
 0x244   : > { %v1137_v19 = vld [vmem:[#allocation4 + $0x6] sm:$0xff]  ;;  %v1138_v21 = vld [vmem:[#allocation4 + $0xe] sm:$0xff] }
 0x245   : > { %v1131_v20 = vld [vmem:[#allocation4 + $0x4] sm:$0xff]  ;;  %2023 = vmatprep.mubr.msk.f32.mxu0 %vm754_vm1, %v1137_v19  ;;  %v1132_v22 = vld [vmem:[#allocation4 + $0xc] sm:$0xff] }
 0x246   : > { %2034 = vmatprep.mubr.msk.f32.mxu1 %vm754_vm1, %v1131_v20  ;;  %2024 = vmatmul.mubr.msk.f32.vlgmr.msra.gmra.mxu0 %vm754_vm1, %v1138_v21  ;;  %v1306_v24 = vld [vmem:[#allocation4 + $0x8] sm:$0xff] }
 0x247   : > { %2035 = vmatmul.mubr.msk.f32.vlgmr.msra.gmra.mxu1 %vm754_vm1, %v1132_v22  ;;  %2038 = vmatpush3.msra.mxu0 %v1312_v58  ;;  %v1589_v58 = vld [vmem:[#allocation15 + $0x48] sm:$0xff] }
 0x248   : > { %2045 = vmatprep.mubr.msk.f32.mxu0 %vm754_vm1, %v1306_v24  ;;  %2039 = vmatprep.subr.mxu0 %v1311_v23 }
 0x249   : > { %2040 = vmatpush3.msra.mxu0 %v1311_v23  ;;  %2049 = vmatpush3.msra.mxu1 %v1422_v28 }
 0x24a   : > { %2041 = vmatprep.subr.mxu0 %v1310_v25  ;;  %2050 = vmatprep.subr.mxu1 %v1421_v30 }
 0x24b   : > { %2042 = vmatpush3.msra.mxu0 %v1310_v25  ;;  %2051 = vmatpush3.msra.mxu1 %v1421_v30 }
 0x24c   : > { %2043 = vmatprep.subr.mxu0 %v1309_v26  ;;  %2052 = vmatprep.subr.mxu1 %v1420_v32 }
 0x24d   : > { %2044 = vmatpush3.msra.mxu0 %v1309_v26  ;;  %2053 = vmatpush3.msra.mxu1 %v1420_v32 }
 0x24e   : > { %2046 = vmatmul.mubr.msk.f32.vlgmr.msra.gmra.mxu0 %vm754_vm1, %v1307_v27  ;;  %2059 = vmatprep.subr.mxu0 %v1415_v29 }
 0x24f   : > { %2060 = vmatpush3.msra.mxu0 %v1415_v29  ;;  %2054 = vmatprep.subr.mxu1 %v1419_v34 }
 0x250   : > { %2061 = vmatprep.subr.mxu0 %v1414_v31  ;;  %2055 = vmatpush3.msra.mxu1 %v1419_v34 }
 0x251   : > { %2062 = vmatpush3.msra.mxu0 %v1414_v31  ;;  %2070 = vmatprep.subr.mxu1 %v1591_v36 }
 0x252   : > { %2063 = vmatprep.subr.mxu0 %v1413_v33 }
 0x253   : > { %2064 = vmatpush3.msra.mxu0 %v1413_v33 }
 0x254   : > { %2065 = vmatprep.subr.mxu0 %v1412_v35 }
 0x255   : > { %2066 = vmatpush3.msra.mxu0 %v1412_v35 }
 0x306   : > { %v2025_v37 = vpop.f32.mrf.mxu0 }
 0x307   : > { %v2036_v38 = vpop.f32.mrf.mxu1 }
 0x308   : > { %v1216_v39 = vpop.f32.mrf.mxu0  ;;  %v1303_v41 = vadd.f32 %v2036_v38, %v2025_v37 }
 0x309   : > { %v1297_v40 = vpop.f32.mrf.mxu1 }
 0x30a   : > { %v1298_v44 = vadd.f32 %v1297_v40, %v1216_v39 }
 0x30e   : > { %v2047_v42 = vpop.f32.mrf.mxu0 }
 0x30f   : > { %v1395_v45 = vadd.f32 %v2047_v42, %v1303_v41 }
 0x310   : > { %v1385_v46 = vpop.f32.mrf.mxu0 }
 0x311   : > { %v1404_v47 = vadd.f32 %v1869_v43, %v1395_v45  ;;  %v1394_v48 = vadd.f32 %v1385_v46, %v1298_v44 }
 0x313   : > { %v1406_v49 = vmax.f32 %v1404_v47, 0.0  ;;  %v1403_v50 = vadd.f32 %v1869_v43, %v1394_v48 }
 0x315   : > { %1409 = vst.msk [vmem:[#allocation5 + $0x10] sm:$0xff] %vm754_vm1, %v1406_v49  ;;  %v1405_v51 = vmax.f32 %v1403_v50, 0.0 }
 0x317   : > { %1408 = vst.msk [vmem:[#allocation5 + $0x8] sm:$0xff] %vm754_vm1, %v1405_v51 }
 0x31c   : > { %v1586_v60 = vld [vmem:[#allocation5 + $0x10] sm:$0xff] }
 0x31e   : > { %v1416_v52 = vld [vmem:[#allocation5 + $0x6] sm:$0xff]  ;;  %v1417_v54 = vld [vmem:[#allocation5 + $0xe] sm:$0xff] }
 0x31f   : > { %v1410_v53 = vld [vmem:[#allocation5 + $0x4] sm:$0xff]  ;;  %2056 = vmatprep.mubr.msk.f32.mxu1 %vm754_vm1, %v1416_v52  ;;  %v1411_v55 = vld [vmem:[#allocation5 + $0xc] sm:$0xff] }
 0x320   : > { %2067 = vmatprep.mubr.msk.f32.mxu0 %vm754_vm1, %v1410_v53  ;;  %2057 = vmatmul.mubr.msk.f32.vlgmr.msra.gmra.mxu1 %vm754_vm1, %v1417_v54  ;;  %v1585_v57 = vld [vmem:[#allocation5 + $0x8] sm:$0xff] }
 0x321   : > { %2068 = vmatmul.mubr.msk.f32.vlgmr.msra.gmra.mxu0 %vm754_vm1, %v1411_v55  ;;  %2071 = vmatpush3.msra.mxu1 %v1591_v36 }
 0x322   : > { %2078 = vmatprep.mubr.msk.f32.mxu1 %vm754_vm1, %v1585_v57  ;;  %2072 = vmatprep.subr.mxu1 %v1590_v56 }
 0x323   : > { %2073 = vmatpush3.msra.mxu1 %v1590_v56 }
 0x324   : > { %2074 = vmatprep.subr.mxu1 %v1589_v58 }
 0x325   : > { %2075 = vmatpush3.msra.mxu1 %v1589_v58 }
 0x326   : > { %2076 = vmatprep.subr.mxu1 %v1588_v59 }
 0x327   : > { %2077 = vmatpush3.msra.mxu1 %v1588_v59 }
 0x328   : > { %2079 = vmatmul.mubr.msk.f32.vlgmr.msra.gmra.mxu1 %vm754_vm1, %v1586_v60 }
 0x3e0   : > { %v2058_v61 = vpop.f32.mrf.mxu1 }
 0x3e1   : > { %v2069_v62 = vpop.f32.mrf.mxu0 }
 0x3e2   : > { %v1495_v63 = vpop.f32.mrf.mxu1  ;;  %v1582_v1 = vadd.f32 %v2069_v62, %v2058_v61 }
 0x3e3   : > { %v1576_v0 = vpop.f32.mrf.mxu0 }
 0x3e4   : > { %v1577_v4 = vadd.f32 %v1576_v0, %v1495_v63 }
 0x3e8   : > { %v2080_v2 = vpop.f32.mrf.mxu1 }
 0x3e9   : > { %v1674_v5 = vadd.f32 %v2080_v2, %v1582_v1 }
 0x3ea   : > { %v1664_v6 = vpop.f32.mrf.mxu1 }
 0x3eb   : > { %v1683_v7 = vadd.f32 %v1876_v3, %v1674_v5  ;;  %v1673_v8 = vadd.f32 %v1664_v6, %v1577_v4 }
 0x3ed   : > { %v1685_v9 = vmax.f32 %v1683_v7, 0.0  ;;  %v1682_v10 = vadd.f32 %v1876_v3, %v1673_v8 }
 0x3ef   : > { %v1687_v11 = vadd.f32 %v1685_v9, %v1127_v16  ;;  %v1684_v12 = vmax.f32 %v1682_v10, 0.0 }
 0x3f1   : > { %v1689_v13 = vmax.f32 %v1687_v11, 0.0  ;;  %v1686_v15 = vadd.f32 %v1684_v12, %v1126_v18 }
 0x3f3   : > { %1691 = vst.msk [vmem:[%s477_s15 + $0x8] sm:$0xff] %vm754_vm1, %v1689_v13  ;;  %v1688_v14 = vmax.f32 %v1686_v15, 0.0 }
 0x3f5   : > { %1690 = vst.msk [vmem:[%s477_s15] sm:$0xff] %vm754_vm1, %v1688_v14 }
 0x3f6   : > { %2354 = shalt.err (!%p2351_p3)
}
 0x3f7   : > { %s2355_s21 = scalar_lea.hbm %s2774_s24, 256  ;;  %s2359_s5 = scalar_lea.hbm %s2832_s11, 512 }
 0x3f8   : > { %p2356_p4 = scmp.ne.s32.totalorder %s2774_s24, %s2355_s21  ;;  %p2360_p2 = scmp.lt.s32.totalorder %s2774_s24, %s2832_s11 }
 0x3f9   : > { %p2361_p7 = scmp.lt.s32.totalorder %s2359_s5, %s2355_s21 }
 0x3fa   : > { %p2357_p12 = pnand %p2356_p4, %p2866_p11 }
 0x3fb   : > { %p2362_p8 = por %p2361_p7, %p2360_p2 }
 0x3fc   : > { %p2358_p6 = pneg %p2357_p12 }
 0x3fe   : > { %p2363_p10 = pnand %p2362_p8, %p2358_p6 }
 0x400   : > { %2366 = shalt.err (!%p2363_p10)
}
 0x401   : > { %s2429_s1 = smov 128   ;;  %s2430_s3 = smov 8  }
 0x402   : > { %2103 = dma.vmem_to_hbm [thread:$0]  (%p2866_p11), %s2776_s27, 256, %s2774_s24, %s1693_s23, %s2429_s1, %s2429_s1, %s2430_s3  }
 0x403 PF: > { %s1721_s9 = sand.u32 1, %s2405_s17   ;;  %p2867_p0 = scmp.ne.s32.totalorder %s2854_s12, 0 }
 0x404   : > { %p2868_p13 = scmp.ge.s32.totalorder %s2417_s20, 2  ;;  %s1722_s13 = scalar_lea.sflag [#allocation8], %s1721_s9 }
 0x406   : > { %p2126_p5 = pnand %p2868_p13, %p2867_p0 }
 0x408   : > { %p2127_p9 = pneg %p2126_p5 }
 0x40a   : > { %2400 = dma.done.wait (%p2127_p9), %s1722_s13, 256  }
 0x40b   : > { %2402 = vsyncadd (%p2127_p9), %s1722_s13, 4294967040  ;;  %p27_p1 = scmp.ge.s32.totalorder %s2602_s30, 4   ;;  %s2869_s17 = smov %s2409_s18 }
 0x40c   : > { %s2870_s18 = smov %s2413_s19  ;;  %s2871_s19 = smov %s2614_s28 }
 0x40d   : > { %s2872_s20 = smov %s2602_s30  ;;  %29 = sbr.rel (!%p27_p1) target bundleno = 14 (0xe), region = 137 }
 0x412   :  { %1727 = vsyncpa [#allocation7], 1 }
 0x413   :  { %1729 = vsyncpa [#allocation7 + $0x1], 1 }
 0x414   :  { %1730 = vsyncpa [#allocation10], 1 }
 0x415   :  { %1731 = vsyncpa [#allocation13], 1 }
 0x416   :  { %1732 = vsyncpa [#allocation16], 1 }
 0x417   :  { %1733 = vsyncpa [#allocation8], 1 }
 0x418   :  { %1735 = vsyncpa [#allocation8 + $0x1], 1 }

</bundles_post_ra>
